<compile_context>
chip_gen: v7x
topology: tpu7x:2x2x1
jax: 0.10.0
libtpu: 0.0.40
codegen_flags: <defaults>
</compile_context>

<pallas_src>
import jax
import jax.numpy as jnp
from jax import lax
from jax.experimental import pallas as pl
from jax.experimental.pallas import tpu as pltpu

# Hyper-params (match the module's __init__)
N_HEAD = 4
D_MODEL = 32
D_HEAD = 8
SCALE = 1.0 / (D_HEAD ** 0.5)
LN_EPS = 1e-5
MASK_NEG = -1e30  # large finite negative instead of -inf (NaN-safe for full-masked rows)


# ----------------------------------------------------------------------------
# Fused forward
# ----------------------------------------------------------------------------
def rel_partial_mha_forward(params, w, r, r_w_bias, r_r_bias, attn_mask):
    qlen, bsz, dm = w.shape
    rlen = r.shape[0]
    assert rlen == qlen, "kernel assumes rlen == klen == qlen (no memory segment)"
    H, D = N_HEAD, D_HEAD
    HD = H * D
    Q, R, B = qlen, rlen, bsz
    W = ((2 * R + 1 + 127) // 128) * 128        # lane-padded rel-shift buffer width

    # Host-side (tiny, one-time per call) layout prep.
    wb = jnp.transpose(w, (1, 0, 2))            # (B, Q, dm): batch-blocked activations
    madd = jnp.where(attn_mask.astype(bool),
                     jnp.float32(MASK_NEG), jnp.float32(0.0))      # (Q, Q) additive
    wqkv_t = params["w_qkv"].T                  # (dm, 3HD)  constants: host .T is free
    wr_t = params["w_r"].T                      # (dm, HD)
    wo_t = params["w_o"].T                      # (HD, dm)

    def kernel(w_ref, r_ref, wqkv_ref, bqkv_ref, wr_ref, br_ref,
               rwb_ref, rrb_ref, mask_ref, wo_ref, bo_ref, g_ref, b_ref, o_ref):
        f32 = jnp.float32
        dn_t = (((1,), (1,)), ((), ()))          # A @ B.T (head-local contractions)

        x = w_ref[0]                                                        # (Q, dm)
        heads = jnp.dot(x, wqkv_ref[...], preferred_element_type=f32) + bqkv_ref[...]
        rk = jnp.dot(r_ref[...], wr_ref[...], preferred_element_type=f32) + br_ref[...]
        # TODO(synk): r_net projection is batch-independent and recomputed per grid
        #             step; hoist it if bsz grows (it is tiny here).

        q = heads[:, :HD]
        k = heads[:, HD:2 * HD]
        v = heads[:, 2 * HD:]
        qw = q + rwb_ref[...]                                               # (Q, HD)
        qr = q + rrb_ref[...]

        madd_k = mask_ref[...]                                              # (Q, Q)
        wo = wo_ref[...]                                                    # (HD, dm)

        # rel-shift rotation control at lane-width 1 (broadcast in the selects below).
        i_row = lax.broadcasted_iota(jnp.int32, (Q, 1), 0)
        s_row = (R - 1) - i_row                                             # (Q, 1)
        zcol = jnp.zeros((Q, 1), f32)
        zpad = jnp.zeros((Q, W - (2 * R + 1)), f32)

        proj = jnp.zeros((Q, dm), f32)           # o_net output, accumulated per head
        for n in range(H):                       # static unroll, H is tiny
            hs = slice(n * D, (n + 1) * D)
            ac = lax.dot_general(qw[:, hs], k[:, hs], dn_t,
                                 preferred_element_type=f32)                # (Q, Q)
            bd = lax.dot_general(qr[:, hs], rk[:, hs], dn_t,
                                 preferred_element_type=f32)                # (Q, R)

            # exact Transformer-XL _rel_shift (R == Q):
            #   out[i,j] = bd[i, j+R-1-i] (j<=i); 0 (j==i+1); bd[i+1, j-i-2] (j>=i+2)
            # i.e. a per-row LEFT rotation by (R-1-i) of [bd_row | 0 | bd_next_row | pad],
            # implemented with log-step pltpu.roll (XLU) + width-1 selects.
            bd_up = pltpu.roll(bd, shift=Q - 1, axis=0)   # bd_up[i] = bd[i+1]; wrap row never read
            buf = jnp.concatenate([bd, zcol, bd_up, zpad], axis=1)          # (Q, W)
            kbit = 1
            while kbit <= R - 1:
                rolled = pltpu.roll(buf, shift=W - kbit, axis=1)            # left-rotate lanes by kbit
                buf = jnp.where((s_row & kbit) != 0, rolled, buf)
                kbit <<= 1
            bd_sh = buf[:, :R]                                              # (Q, Q)

            score = SCALE * (ac + bd_sh) + madd_k       # add_and_scale + additive mask
            m = jnp.max(score, axis=-1, keepdims=True)
            e = jnp.exp(score - m)
            p = e * pl.reciprocal(jnp.sum(e, axis=-1, keepdims=True), approx=True)
            # dropatt: identity (eval mode)

            av = jnp.dot(p, v[:, hs], preferred_element_type=f32)           # (Q, D)
            proj = proj + jnp.dot(av, wo[hs, :], preferred_element_type=f32)  # (Q, dm)

        proj = proj + bo_ref[...]
        # drop: identity (eval mode); post-LayerNorm path (pre_lnorm=False)
        y = x + proj
        mu = jnp.mean(y, axis=-1, keepdims=True)
        yc = y - mu
        var = jnp.mean(yc * yc, axis=-1, keepdims=True)
        o_ref[0] = yc * lax.rsqrt(var + LN_EPS) * g_ref[...] + b_ref[...]

    out_b = pl.pallas_call(
        kernel,
        out_shape=jax.ShapeDtypeStruct((B, Q, dm), jnp.float32),
        grid=(B,),
        in_specs=[
            pl.BlockSpec((1, Q, dm), lambda b: (b, 0, 0)),     # activations, batch b
            pl.BlockSpec((R, dm), lambda b: (0, 0)),           # r
            pl.BlockSpec((dm, 3 * HD), lambda b: (0, 0)),      # qkv weight (pre-transposed)
            pl.BlockSpec((1, 3 * HD), lambda b: (0, 0)),       # qkv bias
            pl.BlockSpec((dm, HD), lambda b: (0, 0)),          # r_net weight (pre-transposed)
            pl.BlockSpec((1, HD), lambda b: (0, 0)),           # r_net bias
            pl.BlockSpec((1, HD), lambda b: (0, 0)),           # r_w_bias (flattened n*D+d)
            pl.BlockSpec((1, HD), lambda b: (0, 0)),           # r_r_bias
            pl.BlockSpec((Q, Q), lambda b: (0, 0)),            # additive attn_mask
            pl.BlockSpec((HD, dm), lambda b: (0, 0)),          # o_net weight (pre-transposed)
            pl.BlockSpec((1, dm), lambda b: (0, 0)),           # o_net bias
            pl.BlockSpec((1, dm), lambda b: (0, 0)),           # layer_norm gamma
            pl.BlockSpec((1, dm), lambda b: (0, 0)),           # layer_norm beta
        ],
        out_specs=pl.BlockSpec((1, Q, dm), lambda b: (b, 0, 0)),
        # Batch axis is independent -> "parallel" so v7x's second TensorCore is used;
        # harmless on single-TC v5e/v6e.
        compiler_params=pltpu.CompilerParams(dimension_semantics=("parallel",)),
    )(wb, r,
      wqkv_t, params["b_qkv"].reshape(1, 3 * HD),
      wr_t, params["b_r"].reshape(1, HD),
      r_w_bias.reshape(1, HD).astype(jnp.float32),
      r_r_bias.reshape(1, HD).astype(jnp.float32),
      madd,
      wo_t, params["b_o"].reshape(1, dm),
      params["ln_g"].reshape(1, dm), params["ln_b"].reshape(1, dm))

    return jnp.transpose(out_b, (1, 0, 2))      # back to (qlen, bsz, d_model)


# ----------------------------------------------------------------------------
# Pure-JAX reference mirroring the PyTorch forward exactly (for validation)
# ----------------------------------------------------------------------------
def _rel_shift_ref(x):
    B, N, Q, R = x.shape
    zp = jnp.zeros((B, N, Q, 1), x.dtype)
    xp = jnp.concatenate([zp, x], axis=3).reshape(B, N, R + 1, Q)
    return xp[:, :, 1:, :].reshape(B, N, Q, R)


def reference_forward(params, w, r, r_w_bias, r_r_bias, attn_mask):
    qlen, bsz, _ = w.shape
    rlen = r.shape[0]
    H, D = N_HEAD, D_HEAD
    w_heads = jnp.einsum("ibm,om->ibo", w, params["w_qkv"]) + params["b_qkv"]
    r_head_k = r @ params["w_r"].T + params["b_r"]
    wq, wk, wv = jnp.split(w_heads, 3, axis=-1)
    klen = wk.shape[0]
    wq = wq.reshape(qlen, bsz, H, D)
    wk = wk.reshape(klen, bsz, H, D)
    wv = wv.reshape(klen, bsz, H, D)
    rk = r_head_k.reshape(rlen, H, D)
    AC = jnp.einsum("ibnd,jbnd->bnij", wq + r_w_bias, wk)
    BD = _rel_shift_ref(jnp.einsum("ibnd,jnd->bnij", wq + r_r_bias, rk))
    score = SCALE * (AC + BD)
    score = jnp.where(attn_mask[None, None, :, :], -jnp.inf, score)
    prob = jax.nn.softmax(score, axis=3)
    vec = jnp.einsum("bnij,jbnd->ibnd", prob, wv).reshape(qlen, bsz, H * D)
    x = w + (vec @ params["w_o"].T + params["b_o"])
    mu = jnp.mean(x, axis=-1, keepdims=True)
    var = jnp.mean((x - mu) ** 2, axis=-1, keepdims=True)
    return (x - mu) / jnp.sqrt(var + LN_EPS) * params["ln_g"] + params["ln_b"]


if __name__ == "__main__":
    key = jax.random.PRNGKey(0)
    ks = jax.random.split(key, 12)
    qlen, bsz = 8, 2

    # Larger weight scales than typical init so that the attention / rel-shift path
    # meaningfully affects the post-LayerNorm output (makes the check discriminative).
    params = {
        "w_qkv": 0.2 * jax.random.normal(ks[0], (3 * N_HEAD * D_HEAD, D_MODEL), jnp.float32),
        "b_qkv": 0.1 * jax.random.normal(ks[1], (3 * N_HEAD * D_HEAD,), jnp.float32),
        "w_r":   0.2 * jax.random.normal(ks[2], (N_HEAD * D_HEAD, D_MODEL), jnp.float32),
        "b_r":   0.1 * jax.random.normal(ks[3], (N_HEAD * D_HEAD,), jnp.float32),
        "w_o":   0.3 * jax.random.normal(ks[4], (D_MODEL, N_HEAD * D_HEAD), jnp.float32),
        "b_o":   0.1 * jax.random.normal(ks[5], (D_MODEL,), jnp.float32),
        "ln_g":  1.0 + 0.1 * jax.random.normal(ks[6], (D_MODEL,), jnp.float32),
        "ln_b":  0.1 * jax.random.normal(ks[7], (D_MODEL,), jnp.float32),
    }

    w = jax.random.normal(ks[8], (qlen, bsz, D_MODEL), jnp.float32)
    r = jax.random.normal(ks[9], (qlen, D_MODEL), jnp.float32)
    r_w_bias = 0.5 * jax.random.normal(ks[10], (N_HEAD, D_HEAD), jnp.float32)
    r_r_bias = 0.5 * jax.random.normal(ks[11], (N_HEAD, D_HEAD), jnp.float32)
    attn_mask = jnp.triu(jnp.ones((qlen, qlen), dtype=bool), k=1)   # causal (mask future)

    fwd = jax.jit(rel_partial_mha_forward)
    out = jax.block_until_ready(fwd(params, w, r, r_w_bias, r_r_bias, attn_mask))

    # Reference at 'highest' matmul precision (scoped, not a global side effect).
    with jax.default_matmul_precision("highest"):
        ref = jax.block_until_ready(
            reference_forward(params, w, r, r_w_bias, r_r_bias, attn_mask))

    assert out.shape == (qlen, bsz, D_MODEL)
    assert bool(jnp.all(jnp.isfinite(out)))
    err = float(jnp.max(jnp.abs(out - ref)))
    # Kernel matmuls run at default (bf16-pass) MXU precision and softmax uses the EUP
    # approx reciprocal -> tolerance covers that; structural bugs (wrong rel_shift /
    # head mapping / mask) produce errors >> 1e-1.
    if err > 3e-2:
        raise AssertionError(f"kernel/reference mismatch, max abs diff = {err}")
    print("KERNEL_OK")
</pallas_src>

<mosaic_0001>
module attributes {stable_mosaic.version = 11 : i64} {
  func.func @kernel(%arg0: i32, %arg1: memref<1x8x32xf32, #tpu.memory_space<vmem>>, %arg2: memref<8x32xf32, #tpu.memory_space<vmem>>, %arg3: memref<32x96xf32, #tpu.memory_space<vmem>>, %arg4: memref<1x96xf32, #tpu.memory_space<vmem>>, %arg5: memref<32x32xf32, #tpu.memory_space<vmem>>, %arg6: memref<1x32xf32, #tpu.memory_space<vmem>>, %arg7: memref<1x32xf32, #tpu.memory_space<vmem>>, %arg8: memref<1x32xf32, #tpu.memory_space<vmem>>, %arg9: memref<8x8xf32, #tpu.memory_space<vmem>>, %arg10: memref<32x32xf32, #tpu.memory_space<vmem>>, %arg11: memref<1x32xf32, #tpu.memory_space<vmem>>, %arg12: memref<1x32xf32, #tpu.memory_space<vmem>>, %arg13: memref<1x32xf32, #tpu.memory_space<vmem>>, %arg14: memref<1x8x32xf32, #tpu.memory_space<vmem>>) attributes {dimension_semantics = [#tpu.dimension_semantics<parallel>], iteration_bounds = array<i64: 2>, scalar_prefetch = 0 : i64, scratch_operands = 0 : i64, tpu.core_type = #tpu.core_type<tc>, window_params = [{transform_indices = @transform_0, window_bounds = array<i64: 1, 8, 32>}, {pipeline_mode = #tpu.pipeline_mode<synchronous>, transform_indices = @transform_1, window_bounds = array<i64: 8, 32>}, {pipeline_mode = #tpu.pipeline_mode<synchronous>, transform_indices = @transform_2, window_bounds = array<i64: 32, 96>}, {pipeline_mode = #tpu.pipeline_mode<synchronous>, transform_indices = @transform_3, window_bounds = array<i64: 1, 96>}, {pipeline_mode = #tpu.pipeline_mode<synchronous>, transform_indices = @transform_4, window_bounds = array<i64: 32, 32>}, {pipeline_mode = #tpu.pipeline_mode<synchronous>, transform_indices = @transform_5, window_bounds = array<i64: 1, 32>}, {pipeline_mode = #tpu.pipeline_mode<synchronous>, transform_indices = @transform_6, window_bounds = array<i64: 1, 32>}, {pipeline_mode = #tpu.pipeline_mode<synchronous>, transform_indices = @transform_7, window_bounds = array<i64: 1, 32>}, {pipeline_mode = #tpu.pipeline_mode<synchronous>, transform_indices = @transform_8, window_bounds = array<i64: 8, 8>}, {pipeline_mode = #tpu.pipeline_mode<synchronous>, transform_indices = @transform_9, window_bounds = array<i64: 32, 32>}, {pipeline_mode = #tpu.pipeline_mode<synchronous>, transform_indices = @transform_10, window_bounds = array<i64: 1, 32>}, {pipeline_mode = #tpu.pipeline_mode<synchronous>, transform_indices = @transform_11, window_bounds = array<i64: 1, 32>}, {pipeline_mode = #tpu.pipeline_mode<synchronous>, transform_indices = @transform_12, window_bounds = array<i64: 1, 32>}, {transform_indices = @transform_13, window_bounds = array<i64: 1, 8, 32>}]} {
    %c0 = arith.constant 0 : index
    %c0_0 = arith.constant 0 : index
    %c0_1 = arith.constant 0 : index
    %0 = vector.load %arg1[%c0, %c0_0, %c0_1] : memref<1x8x32xf32, #tpu.memory_space<vmem>>, vector<1x8x32xf32>
    %1 = vector.shape_cast %0 : vector<1x8x32xf32> to vector<8x32xf32>
    %c0_2 = arith.constant 0 : index
    %c0_3 = arith.constant 0 : index
    %2 = vector.load %arg3[%c0_2, %c0_3] : memref<32x96xf32, #tpu.memory_space<vmem>>, vector<32x96xf32>
    %cst = arith.constant dense<0.000000e+00> : vector<8x96xf32>
    %3 = tpu.matmul %1, %2, %cst {dimension_numbers = #tpu.dot_dimension_numbers<[1], [0], [0], [1], [0, 0, 1, 1], [], []>} : vector<8x32xf32>, vector<32x96xf32>, vector<8x96xf32> -> vector<8x96xf32>
    %c0_4 = arith.constant 0 : index
    %c0_5 = arith.constant 0 : index
    %4 = vector.load %arg4[%c0_4, %c0_5] : memref<1x96xf32, #tpu.memory_space<vmem>>, vector<1x96xf32>
    %5 = vector.broadcast %4 : vector<1x96xf32> to vector<8x96xf32>
    %6 = arith.addf %3, %5 : vector<8x96xf32>
    %c0_6 = arith.constant 0 : index
    %c0_7 = arith.constant 0 : index
    %7 = vector.load %arg2[%c0_6, %c0_7] : memref<8x32xf32, #tpu.memory_space<vmem>>, vector<8x32xf32>
    %c0_8 = arith.constant 0 : index
    %c0_9 = arith.constant 0 : index
    %8 = vector.load %arg5[%c0_8, %c0_9] : memref<32x32xf32, #tpu.memory_space<vmem>>, vector<32x32xf32>
    %cst_10 = arith.constant dense<0.000000e+00> : vector<8x32xf32>
    %9 = tpu.matmul %7, %8, %cst_10 {dimension_numbers = #tpu.dot_dimension_numbers<[1], [0], [0], [1], [0, 0, 1, 1], [], []>} : vector<8x32xf32>, vector<32x32xf32>, vector<8x32xf32> -> vector<8x32xf32>
    %c0_11 = arith.constant 0 : index
    %c0_12 = arith.constant 0 : index
    %10 = vector.load %arg6[%c0_11, %c0_12] : memref<1x32xf32, #tpu.memory_space<vmem>>, vector<1x32xf32>
    %11 = vector.broadcast %10 : vector<1x32xf32> to vector<8x32xf32>
    %12 = arith.addf %9, %11 : vector<8x32xf32>
    %13 = vector.extract_strided_slice %6 {offsets = [0, 0], sizes = [8, 32], strides = [1, 1]} : vector<8x96xf32> to vector<8x32xf32>
    %14 = vector.extract_strided_slice %6 {offsets = [0, 32], sizes = [8, 32], strides = [1, 1]} : vector<8x96xf32> to vector<8x32xf32>
    %15 = vector.extract_strided_slice %6 {offsets = [0, 64], sizes = [8, 32], strides = [1, 1]} : vector<8x96xf32> to vector<8x32xf32>
    %c0_13 = arith.constant 0 : index
    %c0_14 = arith.constant 0 : index
    %16 = vector.load %arg7[%c0_13, %c0_14] : memref<1x32xf32, #tpu.memory_space<vmem>>, vector<1x32xf32>
    %17 = vector.broadcast %16 : vector<1x32xf32> to vector<8x32xf32>
    %18 = arith.addf %13, %17 : vector<8x32xf32>
    %c0_15 = arith.constant 0 : index
    %c0_16 = arith.constant 0 : index
    %19 = vector.load %arg8[%c0_15, %c0_16] : memref<1x32xf32, #tpu.memory_space<vmem>>, vector<1x32xf32>
    %20 = vector.broadcast %19 : vector<1x32xf32> to vector<8x32xf32>
    %21 = arith.addf %13, %20 : vector<8x32xf32>
    %c0_17 = arith.constant 0 : index
    %c0_18 = arith.constant 0 : index
    %22 = vector.load %arg9[%c0_17, %c0_18] : memref<8x8xf32, #tpu.memory_space<vmem>>, vector<8x8xf32>
    %c0_19 = arith.constant 0 : index
    %c0_20 = arith.constant 0 : index
    %23 = vector.load %arg10[%c0_19, %c0_20] : memref<32x32xf32, #tpu.memory_space<vmem>>, vector<32x32xf32>
    %24 = tpu.iota {dimensions = array<i32: 0>} : vector<8x1xi32>
    %c7_i32 = arith.constant 7 : i32
    %25 = vector.broadcast %c7_i32 : i32 to vector<8x1xi32>
    %26 = arith.subi %25, %24 : vector<8x1xi32>
    %cst_21 = arith.constant 0.000000e+00 : f32
    %27 = vector.broadcast %cst_21 : f32 to vector<8x1xf32>
    %cst_22 = arith.constant 0.000000e+00 : f32
    %28 = vector.broadcast %cst_22 : f32 to vector<8x111xf32>
    %cst_23 = arith.constant 0.000000e+00 : f32
    %29 = vector.broadcast %cst_23 : f32 to vector<8x32xf32>
    %30 = vector.extract_strided_slice %18 {offsets = [0, 0], sizes = [8, 8], strides = [1, 1]} : vector<8x32xf32> to vector<8x8xf32>
    %31 = vector.extract_strided_slice %14 {offsets = [0, 0], sizes = [8, 8], strides = [1, 1]} : vector<8x32xf32> to vector<8x8xf32>
    %cst_24 = arith.constant dense<0.000000e+00> : vector<8x8xf32>
    %32 = tpu.matmul %30, %31, %cst_24 {dimension_numbers = #tpu.dot_dimension_numbers<[1], [1], [0], [0], [0, 0, 1, 0], [], []>} : vector<8x8xf32>, vector<8x8xf32>, vector<8x8xf32> -> vector<8x8xf32>
    %33 = vector.extract_strided_slice %21 {offsets = [0, 0], sizes = [8, 8], strides = [1, 1]} : vector<8x32xf32> to vector<8x8xf32>
    %34 = vector.extract_strided_slice %12 {offsets = [0, 0], sizes = [8, 8], strides = [1, 1]} : vector<8x32xf32> to vector<8x8xf32>
    %cst_25 = arith.constant dense<0.000000e+00> : vector<8x8xf32>
    %35 = tpu.matmul %33, %34, %cst_25 {dimension_numbers = #tpu.dot_dimension_numbers<[1], [1], [0], [0], [0, 0, 1, 0], [], []>} : vector<8x8xf32>, vector<8x8xf32>, vector<8x8xf32> -> vector<8x8xf32>
    %c7_i32_26 = arith.constant 7 : i32
    %36 = tpu.dynamic_rotate %35 by %c7_i32_26 dim 0 : vector<8x8xf32>, i32 -> vector<8x8xf32>
    %37 = tpu.concatenate %35, %27, %36, %28 in 1 : vector<8x8xf32>, vector<8x1xf32>, vector<8x8xf32>, vector<8x111xf32> -> vector<8x128xf32>
    %c127_i32 = arith.constant 127 : i32
    %38 = tpu.dynamic_rotate %37 by %c127_i32 dim 1 : vector<8x128xf32>, i32 -> vector<8x128xf32>
    %c1_i32 = arith.constant 1 : i32
    %39 = vector.broadcast %c1_i32 : i32 to vector<8x1xi32>
    %40 = arith.andi %26, %39 : vector<8x1xi32>
    %c0_i32 = arith.constant 0 : i32
    %41 = vector.broadcast %c0_i32 : i32 to vector<8x1xi32>
    %42 = arith.cmpi ne, %40, %41 : vector<8x1xi32>
    %43 = vector.shape_cast %42 : vector<8x1xi1> to vector<8x1xi1>
    %44 = vector.broadcast %43 : vector<8x1xi1> to vector<8x128xi1>
    %45 = arith.select %44, %38, %37 : vector<8x128xi1>, vector<8x128xf32>
    %c126_i32 = arith.constant 126 : i32
    %46 = tpu.dynamic_rotate %45 by %c126_i32 dim 1 : vector<8x128xf32>, i32 -> vector<8x128xf32>
    %c2_i32 = arith.constant 2 : i32
    %47 = vector.broadcast %c2_i32 : i32 to vector<8x1xi32>
    %48 = arith.andi %26, %47 : vector<8x1xi32>
    %c0_i32_27 = arith.constant 0 : i32
    %49 = vector.broadcast %c0_i32_27 : i32 to vector<8x1xi32>
    %50 = arith.cmpi ne, %48, %49 : vector<8x1xi32>
    %51 = vector.shape_cast %50 : vector<8x1xi1> to vector<8x1xi1>
    %52 = vector.broadcast %51 : vector<8x1xi1> to vector<8x128xi1>
    %53 = arith.select %52, %46, %45 : vector<8x128xi1>, vector<8x128xf32>
    %c124_i32 = arith.constant 124 : i32
    %54 = tpu.dynamic_rotate %53 by %c124_i32 dim 1 : vector<8x128xf32>, i32 -> vector<8x128xf32>
    %c4_i32 = arith.constant 4 : i32
    %55 = vector.broadcast %c4_i32 : i32 to vector<8x1xi32>
    %56 = arith.andi %26, %55 : vector<8x1xi32>
    %c0_i32_28 = arith.constant 0 : i32
    %57 = vector.broadcast %c0_i32_28 : i32 to vector<8x1xi32>
    %58 = arith.cmpi ne, %56, %57 : vector<8x1xi32>
    %59 = vector.shape_cast %58 : vector<8x1xi1> to vector<8x1xi1>
    %60 = vector.broadcast %59 : vector<8x1xi1> to vector<8x128xi1>
    %61 = arith.select %60, %54, %53 : vector<8x128xi1>, vector<8x128xf32>
    %62 = vector.extract_strided_slice %61 {offsets = [0, 0], sizes = [8, 8], strides = [1, 1]} : vector<8x128xf32> to vector<8x8xf32>
    %63 = arith.addf %32, %62 : vector<8x8xf32>
    %cst_29 = arith.constant 0.353553385 : f32
    %64 = vector.broadcast %cst_29 : f32 to vector<8x8xf32>
    %65 = arith.mulf %64, %63 : vector<8x8xf32>
    %66 = arith.addf %65, %22 : vector<8x8xf32>
    %cst_30 = arith.constant dense<0xFF800000> : vector<8xf32>
    %67 = vector.multi_reduction <maximumf>, %66, %cst_30 [1] : vector<8x8xf32> to vector<8xf32>
    %68 = vector.shape_cast %67 : vector<8xf32> to vector<8x1xf32>
    %69 = vector.broadcast %68 : vector<8x1xf32> to vector<8x8xf32>
    %70 = arith.subf %66, %69 : vector<8x8xf32>
    %71 = math.exp %70 : vector<8x8xf32>
    %cst_31 = arith.constant dense<0.000000e+00> : vector<8xf32>
    %72 = vector.multi_reduction <add>, %71, %cst_31 [1] : vector<8x8xf32> to vector<8xf32>
    %73 = vector.shape_cast %72 : vector<8xf32> to vector<8x1xf32>
    %74 = tpu.reciprocal %73 {approx = true} : vector<8x1xf32> -> vector<8x1xf32>
    %75 = vector.broadcast %74 : vector<8x1xf32> to vector<8x8xf32>
    %76 = arith.mulf %71, %75 : vector<8x8xf32>
    %77 = vector.extract_strided_slice %15 {offsets = [0, 0], sizes = [8, 8], strides = [1, 1]} : vector<8x32xf32> to vector<8x8xf32>
    %cst_32 = arith.constant dense<0.000000e+00> : vector<8x8xf32>
    %78 = tpu.matmul %76, %77, %cst_32 {dimension_numbers = #tpu.dot_dimension_numbers<[1], [0], [0], [1], [0, 0, 1, 1], [], []>} : vector<8x8xf32>, vector<8x8xf32>, vector<8x8xf32> -> vector<8x8xf32>
    %79 = vector.extract_strided_slice %23 {offsets = [0, 0], sizes = [8, 32], strides = [1, 1]} : vector<32x32xf32> to vector<8x32xf32>
    %cst_33 = arith.constant dense<0.000000e+00> : vector<8x32xf32>
    %80 = tpu.matmul %78, %79, %cst_33 {dimension_numbers = #tpu.dot_dimension_numbers<[1], [0], [0], [1], [0, 0, 1, 1], [], []>} : vector<8x8xf32>, vector<8x32xf32>, vector<8x32xf32> -> vector<8x32xf32>
    %81 = arith.addf %29, %80 : vector<8x32xf32>
    %82 = vector.extract_strided_slice %18 {offsets = [0, 8], sizes = [8, 8], strides = [1, 1]} : vector<8x32xf32> to vector<8x8xf32>
    %83 = vector.extract_strided_slice %14 {offsets = [0, 8], sizes = [8, 8], strides = [1, 1]} : vector<8x32xf32> to vector<8x8xf32>
    %cst_34 = arith.constant dense<0.000000e+00> : vector<8x8xf32>
    %84 = tpu.matmul %82, %83, %cst_34 {dimension_numbers = #tpu.dot_dimension_numbers<[1], [1], [0], [0], [0, 0, 1, 0], [], []>} : vector<8x8xf32>, vector<8x8xf32>, vector<8x8xf32> -> vector<8x8xf32>
    %85 = vector.extract_strided_slice %21 {offsets = [0, 8], sizes = [8, 8], strides = [1, 1]} : vector<8x32xf32> to vector<8x8xf32>
    %86 = vector.extract_strided_slice %12 {offsets = [0, 8], sizes = [8, 8], strides = [1, 1]} : vector<8x32xf32> to vector<8x8xf32>
    %cst_35 = arith.constant dense<0.000000e+00> : vector<8x8xf32>
    %87 = tpu.matmul %85, %86, %cst_35 {dimension_numbers = #tpu.dot_dimension_numbers<[1], [1], [0], [0], [0, 0, 1, 0], [], []>} : vector<8x8xf32>, vector<8x8xf32>, vector<8x8xf32> -> vector<8x8xf32>
    %c7_i32_36 = arith.constant 7 : i32
    %88 = tpu.dynamic_rotate %87 by %c7_i32_36 dim 0 : vector<8x8xf32>, i32 -> vector<8x8xf32>
    %89 = tpu.concatenate %87, %27, %88, %28 in 1 : vector<8x8xf32>, vector<8x1xf32>, vector<8x8xf32>, vector<8x111xf32> -> vector<8x128xf32>
    %c127_i32_37 = arith.constant 127 : i32
    %90 = tpu.dynamic_rotate %89 by %c127_i32_37 dim 1 : vector<8x128xf32>, i32 -> vector<8x128xf32>
    %c1_i32_38 = arith.constant 1 : i32
    %91 = vector.broadcast %c1_i32_38 : i32 to vector<8x1xi32>
    %92 = arith.andi %26, %91 : vector<8x1xi32>
    %c0_i32_39 = arith.constant 0 : i32
    %93 = vector.broadcast %c0_i32_39 : i32 to vector<8x1xi32>
    %94 = arith.cmpi ne, %92, %93 : vector<8x1xi32>
    %95 = vector.shape_cast %94 : vector<8x1xi1> to vector<8x1xi1>
    %96 = vector.broadcast %95 : vector<8x1xi1> to vector<8x128xi1>
    %97 = arith.select %96, %90, %89 : vector<8x128xi1>, vector<8x128xf32>
    %c126_i32_40 = arith.constant 126 : i32
    %98 = tpu.dynamic_rotate %97 by %c126_i32_40 dim 1 : vector<8x128xf32>, i32 -> vector<8x128xf32>
    %c2_i32_41 = arith.constant 2 : i32
    %99 = vector.broadcast %c2_i32_41 : i32 to vector<8x1xi32>
    %100 = arith.andi %26, %99 : vector<8x1xi32>
    %c0_i32_42 = arith.constant 0 : i32
    %101 = vector.broadcast %c0_i32_42 : i32 to vector<8x1xi32>
    %102 = arith.cmpi ne, %100, %101 : vector<8x1xi32>
    %103 = vector.shape_cast %102 : vector<8x1xi1> to vector<8x1xi1>
    %104 = vector.broadcast %103 : vector<8x1xi1> to vector<8x128xi1>
    %105 = arith.select %104, %98, %97 : vector<8x128xi1>, vector<8x128xf32>
    %c124_i32_43 = arith.constant 124 : i32
    %106 = tpu.dynamic_rotate %105 by %c124_i32_43 dim 1 : vector<8x128xf32>, i32 -> vector<8x128xf32>
    %c4_i32_44 = arith.constant 4 : i32
    %107 = vector.broadcast %c4_i32_44 : i32 to vector<8x1xi32>
    %108 = arith.andi %26, %107 : vector<8x1xi32>
    %c0_i32_45 = arith.constant 0 : i32
    %109 = vector.broadcast %c0_i32_45 : i32 to vector<8x1xi32>
    %110 = arith.cmpi ne, %108, %109 : vector<8x1xi32>
    %111 = vector.shape_cast %110 : vector<8x1xi1> to vector<8x1xi1>
    %112 = vector.broadcast %111 : vector<8x1xi1> to vector<8x128xi1>
    %113 = arith.select %112, %106, %105 : vector<8x128xi1>, vector<8x128xf32>
    %114 = vector.extract_strided_slice %113 {offsets = [0, 0], sizes = [8, 8], strides = [1, 1]} : vector<8x128xf32> to vector<8x8xf32>
    %115 = arith.addf %84, %114 : vector<8x8xf32>
    %cst_46 = arith.constant 0.353553385 : f32
    %116 = vector.broadcast %cst_46 : f32 to vector<8x8xf32>
    %117 = arith.mulf %116, %115 : vector<8x8xf32>
    %118 = arith.addf %117, %22 : vector<8x8xf32>
    %cst_47 = arith.constant dense<0xFF800000> : vector<8xf32>
    %119 = vector.multi_reduction <maximumf>, %118, %cst_47 [1] : vector<8x8xf32> to vector<8xf32>
    %120 = vector.shape_cast %119 : vector<8xf32> to vector<8x1xf32>
    %121 = vector.broadcast %120 : vector<8x1xf32> to vector<8x8xf32>
    %122 = arith.subf %118, %121 : vector<8x8xf32>
    %123 = math.exp %122 : vector<8x8xf32>
    %cst_48 = arith.constant dense<0.000000e+00> : vector<8xf32>
    %124 = vector.multi_reduction <add>, %123, %cst_48 [1] : vector<8x8xf32> to vector<8xf32>
    %125 = vector.shape_cast %124 : vector<8xf32> to vector<8x1xf32>
    %126 = tpu.reciprocal %125 {approx = true} : vector<8x1xf32> -> vector<8x1xf32>
    %127 = vector.broadcast %126 : vector<8x1xf32> to vector<8x8xf32>
    %128 = arith.mulf %123, %127 : vector<8x8xf32>
    %129 = vector.extract_strided_slice %15 {offsets = [0, 8], sizes = [8, 8], strides = [1, 1]} : vector<8x32xf32> to vector<8x8xf32>
    %cst_49 = arith.constant dense<0.000000e+00> : vector<8x8xf32>
    %130 = tpu.matmul %128, %129, %cst_49 {dimension_numbers = #tpu.dot_dimension_numbers<[1], [0], [0], [1], [0, 0, 1, 1], [], []>} : vector<8x8xf32>, vector<8x8xf32>, vector<8x8xf32> -> vector<8x8xf32>
    %131 = vector.extract_strided_slice %23 {offsets = [8, 0], sizes = [8, 32], strides = [1, 1]} : vector<32x32xf32> to vector<8x32xf32>
    %cst_50 = arith.constant dense<0.000000e+00> : vector<8x32xf32>
    %132 = tpu.matmul %130, %131, %cst_50 {dimension_numbers = #tpu.dot_dimension_numbers<[1], [0], [0], [1], [0, 0, 1, 1], [], []>} : vector<8x8xf32>, vector<8x32xf32>, vector<8x32xf32> -> vector<8x32xf32>
    %133 = arith.addf %81, %132 : vector<8x32xf32>
    %134 = vector.extract_strided_slice %18 {offsets = [0, 16], sizes = [8, 8], strides = [1, 1]} : vector<8x32xf32> to vector<8x8xf32>
    %135 = vector.extract_strided_slice %14 {offsets = [0, 16], sizes = [8, 8], strides = [1, 1]} : vector<8x32xf32> to vector<8x8xf32>
    %cst_51 = arith.constant dense<0.000000e+00> : vector<8x8xf32>
    %136 = tpu.matmul %134, %135, %cst_51 {dimension_numbers = #tpu.dot_dimension_numbers<[1], [1], [0], [0], [0, 0, 1, 0], [], []>} : vector<8x8xf32>, vector<8x8xf32>, vector<8x8xf32> -> vector<8x8xf32>
    %137 = vector.extract_strided_slice %21 {offsets = [0, 16], sizes = [8, 8], strides = [1, 1]} : vector<8x32xf32> to vector<8x8xf32>
    %138 = vector.extract_strided_slice %12 {offsets = [0, 16], sizes = [8, 8], strides = [1, 1]} : vector<8x32xf32> to vector<8x8xf32>
    %cst_52 = arith.constant dense<0.000000e+00> : vector<8x8xf32>
    %139 = tpu.matmul %137, %138, %cst_52 {dimension_numbers = #tpu.dot_dimension_numbers<[1], [1], [0], [0], [0, 0, 1, 0], [], []>} : vector<8x8xf32>, vector<8x8xf32>, vector<8x8xf32> -> vector<8x8xf32>
    %c7_i32_53 = arith.constant 7 : i32
    %140 = tpu.dynamic_rotate %139 by %c7_i32_53 dim 0 : vector<8x8xf32>, i32 -> vector<8x8xf32>
    %141 = tpu.concatenate %139, %27, %140, %28 in 1 : vector<8x8xf32>, vector<8x1xf32>, vector<8x8xf32>, vector<8x111xf32> -> vector<8x128xf32>
    %c127_i32_54 = arith.constant 127 : i32
    %142 = tpu.dynamic_rotate %141 by %c127_i32_54 dim 1 : vector<8x128xf32>, i32 -> vector<8x128xf32>
    %c1_i32_55 = arith.constant 1 : i32
    %143 = vector.broadcast %c1_i32_55 : i32 to vector<8x1xi32>
    %144 = arith.andi %26, %143 : vector<8x1xi32>
    %c0_i32_56 = arith.constant 0 : i32
    %145 = vector.broadcast %c0_i32_56 : i32 to vector<8x1xi32>
    %146 = arith.cmpi ne, %144, %145 : vector<8x1xi32>
    %147 = vector.shape_cast %146 : vector<8x1xi1> to vector<8x1xi1>
    %148 = vector.broadcast %147 : vector<8x1xi1> to vector<8x128xi1>
    %149 = arith.select %148, %142, %141 : vector<8x128xi1>, vector<8x128xf32>
    %c126_i32_57 = arith.constant 126 : i32
    %150 = tpu.dynamic_rotate %149 by %c126_i32_57 dim 1 : vector<8x128xf32>, i32 -> vector<8x128xf32>
    %c2_i32_58 = arith.constant 2 : i32
    %151 = vector.broadcast %c2_i32_58 : i32 to vector<8x1xi32>
    %152 = arith.andi %26, %151 : vector<8x1xi32>
    %c0_i32_59 = arith.constant 0 : i32
    %153 = vector.broadcast %c0_i32_59 : i32 to vector<8x1xi32>
    %154 = arith.cmpi ne, %152, %153 : vector<8x1xi32>
    %155 = vector.shape_cast %154 : vector<8x1xi1> to vector<8x1xi1>
    %156 = vector.broadcast %155 : vector<8x1xi1> to vector<8x128xi1>
    %157 = arith.select %156, %150, %149 : vector<8x128xi1>, vector<8x128xf32>
    %c124_i32_60 = arith.constant 124 : i32
    %158 = tpu.dynamic_rotate %157 by %c124_i32_60 dim 1 : vector<8x128xf32>, i32 -> vector<8x128xf32>
    %c4_i32_61 = arith.constant 4 : i32
    %159 = vector.broadcast %c4_i32_61 : i32 to vector<8x1xi32>
    %160 = arith.andi %26, %159 : vector<8x1xi32>
    %c0_i32_62 = arith.constant 0 : i32
    %161 = vector.broadcast %c0_i32_62 : i32 to vector<8x1xi32>
    %162 = arith.cmpi ne, %160, %161 : vector<8x1xi32>
    %163 = vector.shape_cast %162 : vector<8x1xi1> to vector<8x1xi1>
    %164 = vector.broadcast %163 : vector<8x1xi1> to vector<8x128xi1>
    %165 = arith.select %164, %158, %157 : vector<8x128xi1>, vector<8x128xf32>
    %166 = vector.extract_strided_slice %165 {offsets = [0, 0], sizes = [8, 8], strides = [1, 1]} : vector<8x128xf32> to vector<8x8xf32>
    %167 = arith.addf %136, %166 : vector<8x8xf32>
    %cst_63 = arith.constant 0.353553385 : f32
    %168 = vector.broadcast %cst_63 : f32 to vector<8x8xf32>
    %169 = arith.mulf %168, %167 : vector<8x8xf32>
    %170 = arith.addf %169, %22 : vector<8x8xf32>
    %cst_64 = arith.constant dense<0xFF800000> : vector<8xf32>
    %171 = vector.multi_reduction <maximumf>, %170, %cst_64 [1] : vector<8x8xf32> to vector<8xf32>
    %172 = vector.shape_cast %171 : vector<8xf32> to vector<8x1xf32>
    %173 = vector.broadcast %172 : vector<8x1xf32> to vector<8x8xf32>
    %174 = arith.subf %170, %173 : vector<8x8xf32>
    %175 = math.exp %174 : vector<8x8xf32>
    %cst_65 = arith.constant dense<0.000000e+00> : vector<8xf32>
    %176 = vector.multi_reduction <add>, %175, %cst_65 [1] : vector<8x8xf32> to vector<8xf32>
    %177 = vector.shape_cast %176 : vector<8xf32> to vector<8x1xf32>
    %178 = tpu.reciprocal %177 {approx = true} : vector<8x1xf32> -> vector<8x1xf32>
    %179 = vector.broadcast %178 : vector<8x1xf32> to vector<8x8xf32>
    %180 = arith.mulf %175, %179 : vector<8x8xf32>
    %181 = vector.extract_strided_slice %15 {offsets = [0, 16], sizes = [8, 8], strides = [1, 1]} : vector<8x32xf32> to vector<8x8xf32>
    %cst_66 = arith.constant dense<0.000000e+00> : vector<8x8xf32>
    %182 = tpu.matmul %180, %181, %cst_66 {dimension_numbers = #tpu.dot_dimension_numbers<[1], [0], [0], [1], [0, 0, 1, 1], [], []>} : vector<8x8xf32>, vector<8x8xf32>, vector<8x8xf32> -> vector<8x8xf32>
    %183 = vector.extract_strided_slice %23 {offsets = [16, 0], sizes = [8, 32], strides = [1, 1]} : vector<32x32xf32> to vector<8x32xf32>
    %cst_67 = arith.constant dense<0.000000e+00> : vector<8x32xf32>
    %184 = tpu.matmul %182, %183, %cst_67 {dimension_numbers = #tpu.dot_dimension_numbers<[1], [0], [0], [1], [0, 0, 1, 1], [], []>} : vector<8x8xf32>, vector<8x32xf32>, vector<8x32xf32> -> vector<8x32xf32>
    %185 = arith.addf %133, %184 : vector<8x32xf32>
    %186 = vector.extract_strided_slice %18 {offsets = [0, 24], sizes = [8, 8], strides = [1, 1]} : vector<8x32xf32> to vector<8x8xf32>
    %187 = vector.extract_strided_slice %14 {offsets = [0, 24], sizes = [8, 8], strides = [1, 1]} : vector<8x32xf32> to vector<8x8xf32>
    %cst_68 = arith.constant dense<0.000000e+00> : vector<8x8xf32>
    %188 = tpu.matmul %186, %187, %cst_68 {dimension_numbers = #tpu.dot_dimension_numbers<[1], [1], [0], [0], [0, 0, 1, 0], [], []>} : vector<8x8xf32>, vector<8x8xf32>, vector<8x8xf32> -> vector<8x8xf32>
    %189 = vector.extract_strided_slice %21 {offsets = [0, 24], sizes = [8, 8], strides = [1, 1]} : vector<8x32xf32> to vector<8x8xf32>
    %190 = vector.extract_strided_slice %12 {offsets = [0, 24], sizes = [8, 8], strides = [1, 1]} : vector<8x32xf32> to vector<8x8xf32>
    %cst_69 = arith.constant dense<0.000000e+00> : vector<8x8xf32>
    %191 = tpu.matmul %189, %190, %cst_69 {dimension_numbers = #tpu.dot_dimension_numbers<[1], [1], [0], [0], [0, 0, 1, 0], [], []>} : vector<8x8xf32>, vector<8x8xf32>, vector<8x8xf32> -> vector<8x8xf32>
    %c7_i32_70 = arith.constant 7 : i32
    %192 = tpu.dynamic_rotate %191 by %c7_i32_70 dim 0 : vector<8x8xf32>, i32 -> vector<8x8xf32>
    %193 = tpu.concatenate %191, %27, %192, %28 in 1 : vector<8x8xf32>, vector<8x1xf32>, vector<8x8xf32>, vector<8x111xf32> -> vector<8x128xf32>
    %c127_i32_71 = arith.constant 127 : i32
    %194 = tpu.dynamic_rotate %193 by %c127_i32_71 dim 1 : vector<8x128xf32>, i32 -> vector<8x128xf32>
    %c1_i32_72 = arith.constant 1 : i32
    %195 = vector.broadcast %c1_i32_72 : i32 to vector<8x1xi32>
    %196 = arith.andi %26, %195 : vector<8x1xi32>
    %c0_i32_73 = arith.constant 0 : i32
    %197 = vector.broadcast %c0_i32_73 : i32 to vector<8x1xi32>
    %198 = arith.cmpi ne, %196, %197 : vector<8x1xi32>
    %199 = vector.shape_cast %198 : vector<8x1xi1> to vector<8x1xi1>
    %200 = vector.broadcast %199 : vector<8x1xi1> to vector<8x128xi1>
    %201 = arith.select %200, %194, %193 : vector<8x128xi1>, vector<8x128xf32>
    %c126_i32_74 = arith.constant 126 : i32
    %202 = tpu.dynamic_rotate %201 by %c126_i32_74 dim 1 : vector<8x128xf32>, i32 -> vector<8x128xf32>
    %c2_i32_75 = arith.constant 2 : i32
    %203 = vector.broadcast %c2_i32_75 : i32 to vector<8x1xi32>
    %204 = arith.andi %26, %203 : vector<8x1xi32>
    %c0_i32_76 = arith.constant 0 : i32
    %205 = vector.broadcast %c0_i32_76 : i32 to vector<8x1xi32>
    %206 = arith.cmpi ne, %204, %205 : vector<8x1xi32>
    %207 = vector.shape_cast %206 : vector<8x1xi1> to vector<8x1xi1>
    %208 = vector.broadcast %207 : vector<8x1xi1> to vector<8x128xi1>
    %209 = arith.select %208, %202, %201 : vector<8x128xi1>, vector<8x128xf32>
    %c124_i32_77 = arith.constant 124 : i32
    %210 = tpu.dynamic_rotate %209 by %c124_i32_77 dim 1 : vector<8x128xf32>, i32 -> vector<8x128xf32>
    %c4_i32_78 = arith.constant 4 : i32
    %211 = vector.broadcast %c4_i32_78 : i32 to vector<8x1xi32>
    %212 = arith.andi %26, %211 : vector<8x1xi32>
    %c0_i32_79 = arith.constant 0 : i32
    %213 = vector.broadcast %c0_i32_79 : i32 to vector<8x1xi32>
    %214 = arith.cmpi ne, %212, %213 : vector<8x1xi32>
    %215 = vector.shape_cast %214 : vector<8x1xi1> to vector<8x1xi1>
    %216 = vector.broadcast %215 : vector<8x1xi1> to vector<8x128xi1>
    %217 = arith.select %216, %210, %209 : vector<8x128xi1>, vector<8x128xf32>
    %218 = vector.extract_strided_slice %217 {offsets = [0, 0], sizes = [8, 8], strides = [1, 1]} : vector<8x128xf32> to vector<8x8xf32>
    %219 = arith.addf %188, %218 : vector<8x8xf32>
    %cst_80 = arith.constant 0.353553385 : f32
    %220 = vector.broadcast %cst_80 : f32 to vector<8x8xf32>
    %221 = arith.mulf %220, %219 : vector<8x8xf32>
    %222 = arith.addf %221, %22 : vector<8x8xf32>
    %cst_81 = arith.constant dense<0xFF800000> : vector<8xf32>
    %223 = vector.multi_reduction <maximumf>, %222, %cst_81 [1] : vector<8x8xf32> to vector<8xf32>
    %224 = vector.shape_cast %223 : vector<8xf32> to vector<8x1xf32>
    %225 = vector.broadcast %224 : vector<8x1xf32> to vector<8x8xf32>
    %226 = arith.subf %222, %225 : vector<8x8xf32>
    %227 = math.exp %226 : vector<8x8xf32>
    %cst_82 = arith.constant dense<0.000000e+00> : vector<8xf32>
    %228 = vector.multi_reduction <add>, %227, %cst_82 [1] : vector<8x8xf32> to vector<8xf32>
    %229 = vector.shape_cast %228 : vector<8xf32> to vector<8x1xf32>
    %230 = tpu.reciprocal %229 {approx = true} : vector<8x1xf32> -> vector<8x1xf32>
    %231 = vector.broadcast %230 : vector<8x1xf32> to vector<8x8xf32>
    %232 = arith.mulf %227, %231 : vector<8x8xf32>
    %233 = vector.extract_strided_slice %15 {offsets = [0, 24], sizes = [8, 8], strides = [1, 1]} : vector<8x32xf32> to vector<8x8xf32>
    %cst_83 = arith.constant dense<0.000000e+00> : vector<8x8xf32>
    %234 = tpu.matmul %232, %233, %cst_83 {dimension_numbers = #tpu.dot_dimension_numbers<[1], [0], [0], [1], [0, 0, 1, 1], [], []>} : vector<8x8xf32>, vector<8x8xf32>, vector<8x8xf32> -> vector<8x8xf32>
    %235 = vector.extract_strided_slice %23 {offsets = [24, 0], sizes = [8, 32], strides = [1, 1]} : vector<32x32xf32> to vector<8x32xf32>
    %cst_84 = arith.constant dense<0.000000e+00> : vector<8x32xf32>
    %236 = tpu.matmul %234, %235, %cst_84 {dimension_numbers = #tpu.dot_dimension_numbers<[1], [0], [0], [1], [0, 0, 1, 1], [], []>} : vector<8x8xf32>, vector<8x32xf32>, vector<8x32xf32> -> vector<8x32xf32>
    %237 = arith.addf %185, %236 : vector<8x32xf32>
    %c0_85 = arith.constant 0 : index
    %c0_86 = arith.constant 0 : index
    %238 = vector.load %arg11[%c0_85, %c0_86] : memref<1x32xf32, #tpu.memory_space<vmem>>, vector<1x32xf32>
    %239 = vector.broadcast %238 : vector<1x32xf32> to vector<8x32xf32>
    %240 = arith.addf %237, %239 : vector<8x32xf32>
    %241 = arith.addf %1, %240 : vector<8x32xf32>
    %cst_87 = arith.constant dense<0.000000e+00> : vector<8xf32>
    %242 = vector.multi_reduction <add>, %241, %cst_87 [1] : vector<8x32xf32> to vector<8xf32>
    %243 = vector.shape_cast %242 : vector<8xf32> to vector<8x1xf32>
    %cst_88 = arith.constant 3.200000e+01 : f32
    %244 = vector.broadcast %cst_88 : f32 to vector<8x1xf32>
    %245 = arith.divf %243, %244 : vector<8x1xf32>
    %246 = vector.broadcast %245 : vector<8x1xf32> to vector<8x32xf32>
    %247 = arith.subf %241, %246 : vector<8x32xf32>
    %248 = arith.mulf %247, %247 : vector<8x32xf32>
    %cst_89 = arith.constant dense<0.000000e+00> : vector<8xf32>
    %249 = vector.multi_reduction <add>, %248, %cst_89 [1] : vector<8x32xf32> to vector<8xf32>
    %250 = vector.shape_cast %249 : vector<8xf32> to vector<8x1xf32>
    %cst_90 = arith.constant 3.200000e+01 : f32
    %251 = vector.broadcast %cst_90 : f32 to vector<8x1xf32>
    %252 = arith.divf %250, %251 : vector<8x1xf32>
    %cst_91 = arith.constant 9.99999974E-6 : f32
    %253 = vector.broadcast %cst_91 : f32 to vector<8x1xf32>
    %254 = arith.addf %252, %253 : vector<8x1xf32>
    %255 = math.rsqrt %254 : vector<8x1xf32>
    %256 = vector.broadcast %255 : vector<8x1xf32> to vector<8x32xf32>
    %257 = arith.mulf %247, %256 : vector<8x32xf32>
    %c0_92 = arith.constant 0 : index
    %c0_93 = arith.constant 0 : index
    %258 = vector.load %arg12[%c0_92, %c0_93] : memref<1x32xf32, #tpu.memory_space<vmem>>, vector<1x32xf32>
    %259 = vector.broadcast %258 : vector<1x32xf32> to vector<8x32xf32>
    %260 = arith.mulf %257, %259 : vector<8x32xf32>
    %c0_94 = arith.constant 0 : index
    %c0_95 = arith.constant 0 : index
    %261 = vector.load %arg13[%c0_94, %c0_95] : memref<1x32xf32, #tpu.memory_space<vmem>>, vector<1x32xf32>
    %262 = vector.broadcast %261 : vector<1x32xf32> to vector<8x32xf32>
    %263 = arith.addf %260, %262 : vector<8x32xf32>
    %c0_96 = arith.constant 0 : index
    %c0_97 = arith.constant 0 : index
    %c0_98 = arith.constant 0 : index
    %264 = vector.load %arg14[%c0_96, %c0_97, %c0_98] : memref<1x8x32xf32, #tpu.memory_space<vmem>>, vector<1x8x32xf32>
    %265 = vector.shape_cast %264 : vector<1x8x32xf32> to vector<8x32xf32>
    %266 = vector.shape_cast %263 : vector<8x32xf32> to vector<1x8x32xf32>
    tpu.vector_store %arg14[%c0_96, %c0_97, %c0_98], %266 {strides = array<i32>} : memref<1x8x32xf32, #tpu.memory_space<vmem>>, vector<1x8x32xf32>,
    return
  }
  func.func @transform_0(%arg0: i32) -> (i32, i32, i32) {
    %c0_i32 = arith.constant 0 : i32
    %c0_i32_0 = arith.constant 0 : i32
    %c0_i32_1 = arith.constant 0 : i32
    return %arg0, %c0_i32, %c0_i32_0 : i32, i32, i32
  }
  func.func @transform_1(%arg0: i32) -> (i32, i32) {
    %c0_i32 = arith.constant 0 : i32
    %c0_i32_0 = arith.constant 0 : i32
    %c0_i32_1 = arith.constant 0 : i32
    return %c0_i32, %c0_i32_0 : i32, i32
  }
  func.func @transform_2(%arg0: i32) -> (i32, i32) {
    %c0_i32 = arith.constant 0 : i32
    %c0_i32_0 = arith.constant 0 : i32
    %c0_i32_1 = arith.constant 0 : i32
    return %c0_i32, %c0_i32_0 : i32, i32
  }
  func.func @transform_3(%arg0: i32) -> (i32, i32) {
    %c0_i32 = arith.constant 0 : i32
    %c0_i32_0 = arith.constant 0 : i32
    %c0_i32_1 = arith.constant 0 : i32
    return %c0_i32, %c0_i32_0 : i32, i32
  }
  func.func @transform_4(%arg0: i32) -> (i32, i32) {
    %c0_i32 = arith.constant 0 : i32
    %c0_i32_0 = arith.constant 0 : i32
    %c0_i32_1 = arith.constant 0 : i32
    return %c0_i32, %c0_i32_0 : i32, i32
  }
  func.func @transform_5(%arg0: i32) -> (i32, i32) {
    %c0_i32 = arith.constant 0 : i32
    %c0_i32_0 = arith.constant 0 : i32
    %c0_i32_1 = arith.constant 0 : i32
    return %c0_i32, %c0_i32_0 : i32, i32
  }
  func.func @transform_6(%arg0: i32) -> (i32, i32) {
    %c0_i32 = arith.constant 0 : i32
    %c0_i32_0 = arith.constant 0 : i32
    %c0_i32_1 = arith.constant 0 : i32
    return %c0_i32, %c0_i32_0 : i32, i32
  }
  func.func @transform_7(%arg0: i32) -> (i32, i32) {
    %c0_i32 = arith.constant 0 : i32
    %c0_i32_0 = arith.constant 0 : i32
    %c0_i32_1 = arith.constant 0 : i32
    return %c0_i32, %c0_i32_0 : i32, i32
  }
  func.func @transform_8(%arg0: i32) -> (i32, i32) {
    %c0_i32 = arith.constant 0 : i32
    %c0_i32_0 = arith.constant 0 : i32
    %c0_i32_1 = arith.constant 0 : i32
    return %c0_i32, %c0_i32_0 : i32, i32
  }
  func.func @transform_9(%arg0: i32) -> (i32, i32) {
    %c0_i32 = arith.constant 0 : i32
    %c0_i32_0 = arith.constant 0 : i32
    %c0_i32_1 = arith.constant 0 : i32
    return %c0_i32, %c0_i32_0 : i32, i32
  }
  func.func @transform_10(%arg0: i32) -> (i32, i32) {
    %c0_i32 = arith.constant 0 : i32
    %c0_i32_0 = arith.constant 0 : i32
    %c0_i32_1 = arith.constant 0 : i32
    return %c0_i32, %c0_i32_0 : i32, i32
  }
  func.func @transform_11(%arg0: i32) -> (i32, i32) {
    %c0_i32 = arith.constant 0 : i32
    %c0_i32_0 = arith.constant 0 : i32
    %c0_i32_1 = arith.constant 0 : i32
    return %c0_i32, %c0_i32_0 : i32, i32
  }
  func.func @transform_12(%arg0: i32) -> (i32, i32) {
    %c0_i32 = arith.constant 0 : i32
    %c0_i32_0 = arith.constant 0 : i32
    %c0_i32_1 = arith.constant 0 : i32
    return %c0_i32, %c0_i32_0 : i32, i32
  }
  func.func @transform_13(%arg0: i32) -> (i32, i32, i32) {
    %c0_i32 = arith.constant 0 : i32
    %c0_i32_0 = arith.constant 0 : i32
    %c0_i32_1 = arith.constant 0 : i32
    return %arg0, %c0_i32, %c0_i32_0 : i32, i32, i32
  }
}

</mosaic_0001>

<bundles_post_ra>
// kernel: rel_partial_mha_forward.1
= control target key start
LH: loop header
LB: loop body
LE: loop exit
PB: predicated region body
PF: predicated region fallthrough
CT: control target
= control target key end

     0   :  { %s2417_s25 = smov 0   ;;  %s2703_s0 = inlined_call_operand.vmem [shape: f32[2,8,32], index: 0, kind: input, shape index: {}]   ;;  %s2704_s1 = inlined_call_operand.vmem [shape: f32[8,32], index: 1, kind: input, shape index: {}]   ;;  %s2705_s2 = inlined_call_operand.vmem [shape: f32[32,96], index: 2, kind: input, shape index: {}]   ;;  %s2706_s3 = inlined_call_operand.vmem [shape: f32[1,96], index: 3, kind: input, shape index: {}]   ;;  %s2707_s4 = inlined_call_operand.vmem [shape: f32[32,32], index: 4, kind: input, shape index: {}]   ;;  %s2708_s5 = inlined_call_operand.vmem [shape: f32[1,32], index: 5, kind: input, shape index: {}]   ;;  %s2709_s6 = inlined_call_operand.vmem [shape: f32[1,32], index: 6, kind: input, shape index: {}]   ;;  %s2710_s7 = inlined_call_operand.vmem [shape: f32[1,32], index: 7, kind: input, shape index: {}]   ;;  %s2711_s8 = inlined_call_operand.vmem [shape: f32[8,8], index: 8, kind: input, shape index: {}]   ;;  %s2712_s9 = inlined_call_operand.vmem [shape: f32[32,32], index: 9, kind: input, shape index: {}]   ;;  %s2713_s10 = inlined_call_operand.vmem [shape: f32[1,32], index: 10, kind: input, shape index: {}]   ;;  %s2714_s11 = inlined_call_operand.vmem [shape: f32[1,32], index: 11, kind: input, shape index: {}]   ;;  %s2715_s12 = inlined_call_operand.vmem [shape: f32[1,32], index: 12, kind: input, shape index: {}]   ;;  %s2716_s13 = inlined_call_operand.vmem [shape: f32[2,8,32], index: 13, kind: output, shape index: {}]  }
   0x1 LB: > { %s2079_s26 = sadd.s32 4294967295, %s2327_s25   ;;  %p2083_p0 = scmp.ge.s32.totalorder %s2327_s25, 1  ;;  %s2327_s25 = sphi %s2417_s25, %s23_s25  }
   0x2   : > { %p386_p1 = scmp.lt.s32.totalorder %s2327_s25, 3 }
   0x4   : > { %p387_p2 = pnand %p2083_p0, %p386_p1 }
   0x5   : > { %v437_v0 = vld [vmem:[%s2705_s2] sm:$0xff] (!%p387_p2)  ;;  %v438_v1 = vld [vmem:[%s2705_s2 + $0x8] sm:$0xff] (!%p387_p2)  ;;  %v2329_v3 = vmov (!%p387_p2), 0.0|0.0   ;;  %v439_v6 = vld [vmem:[%s2705_s2 + $0x10] sm:$0xff] (!%p387_p2)  ;;  %p428_p3 = scmp.lt.s32.totalorder (!%p387_p2), %s2079_s26, 1  ;;  %vm2330_vm0 = vmmov (!%p387_p2), 0   ;;  %v628_v39 = vlaneseq (!%p387_p2) }
   0x6   : > { %390 = sbr.rel (%p387_p2) target bundleno = 4859 (0x12fb), region = 72  ;;  %v523_v2 = vld [vmem:[%s2707_s4] sm:$0xff] (!%p387_p2)  ;;  %2265 = vmatprep.subr.bf16.mxu0 (!%p387_p2), %v2329_v3  ;;  %2271 = vmatprep.subr.bf16.mxu1 (!%p387_p2), %v2329_v3  ;;  %v2266_v4 = vpack.c.bf16 (!%p387_p2), %v438_v1, %v437_v0  ;;  %v524_v5 = vld [vmem:[%s2707_s4 + $0x8] sm:$0xff] (!%p387_p2)  ;;  %v440_v7 = vld [vmem:[%s2705_s2 + $0x18] sm:$0xff] (!%p387_p2)  ;;  %v2331_v11 = vmov (!%p387_p2), 0.0   ;;  %vm448_vm1 = vcmask (!%p387_p2), 261120  }
   0x7   : > { %v2272_v8 = vpack.c.bf16 (!%p387_p2), %v524_v5, %v523_v2  ;;  %v525_v9 = vld [vmem:[%s2707_s4 + $0x10] sm:$0xff] (!%p387_p2)  ;;  %v526_v10 = vld [vmem:[%s2707_s4 + $0x18] sm:$0xff] (!%p387_p2)  ;;  %2171 = vmatprep.mubr.msk.f32.mxu0 (!%p387_p2), %vm2330_vm0, %v2331_v11  ;;  %2182 = vmatprep.mubr.msk.f32.mxu1 (!%p387_p2), %vm2330_vm0, %v2331_v11  ;;  %v2269_v12 = vpack.c.bf16 (!%p387_p2), %v440_v7, %v439_v6  ;;  %v522_v15 = vld [vmem:[%s2704_s1] sm:$0xff] (!%p387_p2)  ;;  %vm631_vm2 = vcmask (!%p387_p2), 64512   ;;  %s2332_s23 = smov (!%p387_p2), 96   ;;  %s2333_s29 = smov (!%p387_p2), 9  }
   0x8   : > { %2267 = vmatpush3.bf16.msra.mxu0 (!%p387_p2), %v2266_v4  ;;  %v2275_v13 = vpack.c.bf16 (!%p387_p2), %v526_v10, %v525_v9  ;;  %v2086_v16 = vld [vmem:[%s2706_s3] ss:$0 sm:$0xff] (!%p387_p2)  ;;  %s2334_s30 = smov (!%p387_p2), 120   ;;  %vm714_vm3 = vcmask (!%p387_p2), 72704   ;;  %vm716_vm4 = vcmask (!%p387_p2), 138240   ;;  %v629_v40 = vshrl.u32 (!%p387_p2), %v628_v39, 7 }
   0x9   : > { %2273 = vmatpush3.bf16.msra.mxu1 (!%p387_p2), %v2272_v8  ;;  %2268 = vmatprep.subr.bf16.mxu0 (!%p387_p2), %v2329_v3  ;;  %v2088_v17 = vld [vmem:[%s2708_s5] ss:$0 sm:$0xff] (!%p387_p2)  ;;  %s2336_s15 = smov (!%p387_p2), 126   ;;  %s2337_s16 = smov (!%p387_p2), 124  }
   0xa   : > { %2274 = vmatprep.subr.bf16.mxu1 (!%p387_p2), %v2329_v3  ;;  %v2091_v19 = vld [vmem:[%s2710_s7] ss:$0 sm:$0xff] (!%p387_p2)  ;;  %v630_v41 = vsub.s32 (!%p387_p2), 7, %v629_v40  ;;  %s2338_s19 = smov (!%p387_p2), 88   ;;  %s2339_s20 = smov (!%p387_p2), 64   ;;  %v625_v40 = vld [vmem:[%s2712_s9 + $0x8] sm:$0xff] (!%p387_p2) }
   0xb   : > { %v2090_v26 = vld [vmem:[%s2709_s6] ss:$0 sm:$0xff] (!%p387_p2)  ;;  %s2340_s21 = smov (!%p387_p2), 56   ;;  %s2341_s22 = smov (!%p387_p2), 112  }
   0xc   : > { %2270 = vmatpush3.bf16.msra.mxu0 (!%p387_p2), %v2269_v12  ;;  %v720_v42 = vand.u32 (!%p387_p2), 1, %v630_v41  ;;  %v727_v46 = vand.u32 (!%p387_p2), 2, %v630_v41  ;;  %v734_v51 = vand.u32 (!%p387_p2), 4, %v630_v41  ;;  %v2548_v56 = vld [vmem:[%s2711_s8] sm:$0xff] (!%p387_p2)  ;;  %s2343_s18 = smov (!%p387_p2), 104  }
   0xd   : > { %s2724_s26 = smov (!%p428_p3, %s2079_s26), 1  ;;  %2276 = vmatpush3.bf16.msra.mxu1 %v2275_v13  ;;  %2185 = vmatprep.subr.mxu0 %v2331_v11 }
   0xe   : > { %s2084_s28 = sshll.u32 %s2724_s26, 3  ;;  %2190 = vmatprep.subr.mxu1 %v2331_v11  ;;  %vm2520_vm5 = vcmp.ne.s32.totalorder %v720_v42, 0  ;;  %vm2529_vm6 = vcmp.ne.s32.totalorder %v727_v46, 0  ;;  %vm2539_vm7 = vcmp.ne.s32.totalorder %v734_v51, 0 }
   0xf   : > { %s431_s14 = scalar_lea.vmem %s2703_s0, %s2084_s28 }
  0x10   : > { %v2461_v14 = vld [vmem:[%s431_s14] sm:$0xff]  ;;  %2183 = vmatmul.mubr.msk.f32.vlgmr.msra.gmra.mrb[0].mxu1 %vm448_vm1, %v522_v15  ;;  %s2335_s14 = smov 127  }
  0x11   : > { %2172 = vmatmul.mubr.msk.f32.vlgmr.msra.gmra.mrb[0].mxu0 %vm448_vm1, %v2461_v14  ;;  %2192 = vmatprep.mubr.msk.f32.mxu1 %vm2330_vm0, %v2331_v11 }
  0x12   : > { %2187 = vmatprep.mubr.msk.f32.mxu0 %vm2330_vm0, %v2331_v11 }
  0xe3   : > { %v603_v21 = vpop.f32.mrb[0].mxu1 }
  0xe4   : > { %v518_v18 = vpop.f32.mrb[0].mxu0  ;;  %v2486_v23 = vadd.f32 %v2088_v17, %v603_v21  ;;  %v2184_v24 = vpop.f32.mrb[1].mxu1 }
  0xe5   : > { %v2484_v20 = vadd.f32 %v2086_v16, %v518_v18  ;;  %v2173_v22 = vpop.f32.mrb[1].mxu0 }
  0xe6   : > { %2186 = vmatpush3.xpose.msk.msra.mxu0 %vm631_vm2, %v2486_v23 }
  0xe7   : > { %740 = vrot.lane.b32.xlu0 %v2484_v20, %s2332_s23  ;;  %v2490_v25 = vadd.f32 %v2091_v19, %v2484_v20  ;;  %2195 = vmatprep.subr.mxu0 %v2331_v11  ;;  %v2504_v28 = vadd.f32 %v2090_v26, %v2484_v20  ;;  %s2342_s23 = smov 80  }
  0xe9   : > { %2188 = vmatmul.mubr.msk.f32.vlgmr.msra.gmra.mrb[2].mxu0 %vm631_vm2, %v2490_v25 }
  0xea   : > { %2197 = vmatprep.mubr.msk.f32.mxu0 %vm2330_vm0, %v2331_v11 }
 0x159   : > { %v741_v27 = vpop.permute.xlu0 %740 }
 0x15a   : > { %2191 = vmatpush3.xpose.msk.msra.mxu1 %vm631_vm2, %v741_v27 }
 0x15b   : > { %2200 = vmatprep.subr.mxu1 %v2331_v11 }
 0x15d   : > { %2193 = vmatmul.mubr.msk.f32.vlgmr.msra.gmra.mrb[2].mxu1 %vm631_vm2, %v2504_v28 }
 0x15e   : > { %2202 = vmatprep.mubr.msk.f32.mxu1 %vm2330_vm0, %v2331_v11 }
 0x1bc   : > { %v704_v29 = vpop.f32.mrb[2].mxu0 }
 0x1bd   : > { %v708_v30 = vrot.slane %v704_v29, 1  ;;  %v2189_v31 = vpop.f32.mrb[3].mxu0  ;;  %v713_v34 = vsel %vm631_vm2, %v704_v29, 0.0 }
 0x1bf   : > { %710 = vrot.lane.b32.xlu0 %v708_v30, %s2333_s29 }
 0x1c3   : > { %908 = vrot.lane.b32.xlu0 %v2486_v23, %s2334_s30 }
 0x230   : > { %v813_v32 = vpop.f32.mrb[2].mxu1 }
 0x231   : > { %v2194_v33 = vpop.f32.mrb[3].mxu1  ;;  %v711_v35 = vpop.permute.xlu0 %710 }
 0x232   : > { %v715_v36 = vsel %vm714_vm3, %v713_v34, %v711_v35 }
 0x233   : > { %v717_v37 = vsel %vm716_vm4, %v715_v36, 0.0 }
 0x234   : > { %718 = vrot.lane.b32.xlu1 %v717_v37, %s2335_s14 }
 0x235   : > { %v909_v38 = vpop.permute.xlu0 %908 }
 0x236   : > { %2201 = vmatpush3.xpose.msk.msra.mxu1 %vm631_vm2, %v909_v38 }
 0x237   : > { %2210 = vmatprep.subr.mxu1 %v2331_v11 }
 0x2a6   : > { %v719_v44 = vpop.permute.xlu1 %718 }
 0x2a7   : > { %v724_v45 = vsel %vm2520_vm5, %v719_v44, %v717_v37 }
 0x2a8   : > { %725 = vrot.lane.b32.xlu1 %v724_v45, %s2336_s15 }
 0x2ac   : > { %906 = vrot.lane.b32.xlu1 %v2490_v25, %s2334_s30 }
 0x31a   : > { %v726_v48 = vpop.permute.xlu1 %725 }
 0x31b   : > { %v731_v49 = vsel %vm2529_vm6, %v726_v48, %v724_v45  ;;  %v624_v45 = vld [vmem:[%s2712_s9] sm:$0xff] }
 0x31c   : > { %732 = vrot.lane.b32.xlu0 %v731_v49, %s2337_s16 }
 0x31e   : > { %v907_v50 = vpop.permute.xlu1 %906 }
 0x31f   : > { %2203 = vmatmul.mubr.msk.f32.vlgmr.msra.gmra.mrb[4].mxu1 %vm631_vm2, %v907_v50 }
 0x320   : > { %2212 = vmatprep.mubr.msk.f32.mxu1 %vm2330_vm0, %v2331_v11 }
 0x38e   : > { %v733_v53 = vpop.permute.xlu0 %732 }
 0x38f   : > { %v738_v54 = vsel %vm2539_vm7, %v733_v53, %v731_v49 }
 0x390   : > { %v814_v55 = vadd.f32 %v813_v32, %v738_v54 }
 0x392   : > { %v817_v57 = vmul.f32 0.35355338, %v814_v55 }
 0x394   : > { %v818_v58 = vadd.f32 %v817_v57, %v2548_v56 }
 0x396   : > { %v819_v59 = vsel %vm631_vm2, %v818_v58, -inf }
 0x397   : > { %820 = vmax.xlane.f32.xlu1 %v819_v59 }
 0x3a8   : > { %1003 = vrot.lane.b32.xlu1 %v2484_v20, %s2338_s19  ;;  %s2344_s19 = smov 48  }
 0x3ac   : > { %1001 = vrot.lane.b32.xlu1 %v2504_v28, %s2334_s30 }
 0x3f2   : > { %v980_v60 = vpop.f32.mrb[4].mxu1 }
 0x3f3   : > { %v2204_v61 = vpop.f32.mrb[5].mxu1  ;;  %v984_v3 = vrot.slane %v980_v60, 1  ;;  %v989_v6 = vsel %vm631_vm2, %v980_v60, 0.0 }
 0x424   : > { %v821_v62 = vpop.xlane.xlu1 %820 }
 0x425   : > { %v822_v63 = vsub.f32 %v818_v58, %v821_v62 }
 0x427   : > { %v823_v0 = vmul.f32 1.442695, %v822_v63 }
 0x428   : > { %v1004_v12 = vpop.permute.xlu1 %1003 }
 0x429   : > { %2303 = vpow2.f32 %v823_v0 }
 0x42c   : > { %v1002_v15 = vpop.permute.xlu1 %1001 }
 0x433   : > { %v2304_v1 = vpop.eup %2303 }
 0x434   : > { %v825_v2 = vsel %vm631_vm2, %v2304_v1, 0.0 }
 0x435   : > { %826 = vadd.xlane.f32.xlu0 %v825_v2 }
 0x44b   : > { %830 = vrot.lane.b32.xlu0 %v2484_v20, %s2339_s20  ;;  %s2345_s20 = smov 72  }
 0x44f   : > { %986 = vrot.lane.b32.xlu0 %v984_v3, %s2333_s29 }
 0x4c2   : > { %v827_v4 = vpop.xlane.xlu0 %826 }
 0x4c3   : > { %2305 = vrcp.f32 %v827_v4 }
 0x4c6   : > { %v831_v5 = vpop.permute.xlu0 %830 }
 0x4c7   : > { %2196 = vmatpush3.msra.mxu0 %v831_v5 }
 0x4c8   : > { %2205 = vmatprep.subr.mxu0 %v2331_v11 }
 0x4ca   : > { %v987_v7 = vpop.permute.xlu0 %986 }
 0x4cb   : > { %v990_v8 = vsel %vm714_vm3, %v989_v6, %v987_v7 }
 0x4cc   : > { %v991_v9 = vsel %vm716_vm4, %v990_v8, 0.0 }
 0x4cd   : > { %v2306_v10 = vpop.eup %2305  ;;  %992 = vrot.lane.b32.xlu1 %v991_v9, %s2335_s14 }
 0x4ce   : > { %v829_v13 = vmul.f32 %v2306_v10, %v2304_v1 }
 0x4d0   : > { %2198 = vmatmul.mubr.msk.f32.vlgmr.msra.gmra.mrb[4].mxu0 %vm631_vm2, %v829_v13 }
 0x4d1   : > { %2206 = vmatpush3.xpose.msk.msra.mxu0 %vm631_vm2, %v1004_v12  ;;  %2207 = vmatprep.mubr.msk.f32.mxu0 %vm2330_vm0, %v2331_v11 }
 0x4d2   : > { %2215 = vmatprep.subr.mxu0 %v2331_v11 }
 0x4d4   : > { %2208 = vmatmul.mubr.msk.f32.vlgmr.msra.gmra.mrb[6].mxu0 %vm631_vm2, %v1002_v15 }
 0x4d5   : > { %2217 = vmatprep.mubr.msk.f32.mxu0 %vm2330_vm0, %v2331_v11  ;;  %2216 = vmatpush3.msra.mxu0 %v625_v40 }
 0x4d6   : > { %2225 = vmatprep.subr.mxu0 %v2331_v11 }
 0x53f   : > { %v993_v16 = vpop.permute.xlu1 %992 }
 0x540   : > { %v994_v17 = vsel %vm2520_vm5, %v993_v16, %v991_v9 }
 0x541   : > { %995 = vrot.lane.b32.xlu0 %v994_v17, %s2336_s15 }
 0x5a3   : > { %v902_v18 = vpop.f32.mrb[4].mxu0 }
 0x5a4   : > { %v2199_v19 = vpop.f32.mrb[5].mxu0 }
 0x5a7   : > { %v1075_v21 = vpop.f32.mrb[6].mxu0 }
 0x5a8   : > { %v2209_v22 = vpop.f32.mrb[7].mxu0 }
 0x5b3   : > { %v996_v24 = vpop.permute.xlu0 %995 }
 0x5b4   : > { %v997_v26 = vsel %vm2529_vm6, %v996_v24, %v994_v17 }
 0x5b5   : > { %998 = vrot.lane.b32.xlu1 %v997_v26, %s2337_s16 }
 0x627   : > { %v999_v27 = vpop.permute.xlu1 %998 }
 0x628   : > { %v1000_v29 = vsel %vm2539_vm7, %v999_v27, %v997_v26 }
 0x629   : > { %v1076_v30 = vadd.f32 %v1075_v21, %v1000_v29 }
 0x62b   : > { %v1079_v31 = vmul.f32 0.35355338, %v1076_v30 }
 0x62d   : > { %v1080_v32 = vadd.f32 %v1079_v31, %v2548_v56 }
 0x62f   : > { %v1081_v33 = vsel %vm631_vm2, %v1080_v32, -inf }
 0x630   : > { %1082 = vmax.xlane.f32.xlu0 %v1081_v33 }
 0x646   : > { %1092 = vrot.lane.b32.xlu0 %v2484_v20, %s2340_s21 }
 0x64a   : > { %1314 = vrot.lane.b32.xlu0 %v2490_v25, %s2341_s22 }
 0x64e   : > { %1409 = vrot.lane.b32.xlu0 %v2504_v28, %s2341_s22 }
 0x6bd   : > { %v1083_v34 = vpop.xlane.xlu0 %1082 }
 0x6be   : > { %v1084_v35 = vsub.f32 %v1080_v32, %v1083_v34 }
 0x6c0   : > { %v1085_v36 = vmul.f32 1.442695, %v1084_v35 }
 0x6c1   : > { %v1093_v37 = vpop.permute.xlu0 %1092 }
 0x6c2   : > { %2307 = vpow2.f32 %v1085_v36  ;;  %2211 = vmatpush3.msra.mxu1 %v1093_v37 }
 0x6c3   : > { %2220 = vmatprep.subr.mxu1 %v2331_v11 }
 0x6c5   : > { %v1315_v48 = vpop.permute.xlu0 %1314 }
 0x6c9   : > { %v1410_v50 = vpop.permute.xlu0 %1409 }
 0x6cc   : > { %v2308_v38 = vpop.eup %2307 }
 0x6cd   : > { %v1087_v39 = vsel %vm631_vm2, %v2308_v38, 0.0 }
 0x6ce   : > { %1088 = vadd.xlane.f32.xlu1 %v1087_v39 }
 0x6df   : > { %1316 = vrot.lane.b32.xlu1 %v2486_v23, %s2341_s22 }
 0x6e3   : > { %1411 = vrot.lane.b32.xlu1 %v2484_v20, %s2342_s23 }
 0x75b   : > { %v1089_v41 = vpop.xlane.xlu1 %1088 }
 0x75c   : > { %2309 = vrcp.f32 %v1089_v41 }
 0x75f   : > { %v1317_v46 = vpop.permute.xlu1 %1316 }
 0x763   : > { %v1412_v49 = vpop.permute.xlu1 %1411 }
 0x766   : > { %v2310_v42 = vpop.eup %2309 }
 0x767   : > { %v1091_v44 = vmul.f32 %v2310_v42, %v2308_v38 }
 0x769   : > { %2213 = vmatmul.mubr.msk.f32.vlgmr.msra.gmra.mrb[6].mxu1 %vm631_vm2, %v1091_v44 }
 0x76a   : > { %2221 = vmatpush3.msra.mxu1 %v624_v45  ;;  %2222 = vmatprep.mubr.msk.f32.mxu1 %vm2330_vm0, %v2331_v11 }
 0x76b   : > { %2230 = vmatprep.subr.mxu1 %v2331_v11 }
 0x76d   : > { %2223 = vmatmul.mubr.msk.f32.vlgmr.msra.gmra.mrb[8].mxu1 %vm631_vm2, %v902_v18 }
 0x76e   : > { %2232 = vmatprep.mubr.msk.f32.mxu1 %vm2330_vm0, %v2331_v11 }
 0x771   : > { %2231 = vmatpush3.xpose.msk.msra.mxu1 %vm631_vm2, %v1412_v49 }
 0x772   : > { %2240 = vmatprep.subr.mxu1 %v2331_v11 }
 0x774   : > { %2233 = vmatmul.mubr.msk.f32.vlgmr.msra.gmra.mrb[10].mxu1 %vm631_vm2, %v1410_v50 }
 0x775   : > { %2242 = vmatprep.mubr.msk.f32.mxu1 %vm2330_vm0, %v2331_v11 }
 0x83c   : > { %v1164_v51 = vpop.f32.mrb[6].mxu1 }
 0x83d   : > { %v2214_v53 = vpop.f32.mrb[7].mxu1  ;;  %2218 = vmatmul.mubr.msk.f32.vlgmr.msra.gmra.mrb[8].mxu0 %vm631_vm2, %v1164_v51 }
 0x83e   : > { %2226 = vmatpush3.xpose.msk.msra.mxu0 %vm631_vm2, %v1317_v46  ;;  %2227 = vmatprep.mubr.msk.f32.mxu0 %vm2330_vm0, %v2331_v11 }
 0x83f   : > { %2235 = vmatprep.subr.mxu0 %v2331_v11 }
 0x840   : > { %v1310_v54 = vpop.f32.mrb[8].mxu1 }
 0x841   : > { %v2224_v55 = vpop.f32.mrb[9].mxu1  ;;  %2228 = vmatmul.mubr.msk.f32.vlgmr.msra.gmra.mrb[10].mxu0 %vm631_vm2, %v1315_v48 }
 0x842   : > { %2237 = vmatprep.mubr.msk.f32.mxu0 %vm2330_vm0, %v2331_v11 }
 0x847   : > { %v1483_v57 = vpop.f32.mrb[10].mxu1 }
 0x848   : > { %v2234_v58 = vpop.f32.mrb[11].mxu1 }
 0x910   : > { %v1237_v59 = vpop.f32.mrb[8].mxu0 }
 0x911   : > { %v2615_v60 = vadd.f32 %v1310_v54, %v1237_v59  ;;  %v2219_v61 = vpop.f32.mrb[9].mxu0 }
 0x914   : > { %v1388_v62 = vpop.f32.mrb[10].mxu0 }
 0x915   : > { %v1392_v63 = vrot.slane %v1388_v62, 1  ;;  %v2229_v0 = vpop.f32.mrb[11].mxu0  ;;  %v1397_v1 = vsel %vm631_vm2, %v1388_v62, 0.0 }
 0x917   : > { %1394 = vrot.lane.b32.xlu1 %v1392_v63, %s2333_s29 }
 0x989   : > { %v1395_v2 = vpop.permute.xlu1 %1394 }
 0x98a   : > { %v1398_v3 = vsel %vm714_vm3, %v1397_v1, %v1395_v2 }
 0x98b   : > { %v1399_v4 = vsel %vm716_vm4, %v1398_v3, 0.0  ;;  %v2116_v3 = vld [vmem:[%s2713_s10] ss:$0 sm:$0xff] }
 0x98c   : > { %1400 = vrot.lane.b32.xlu0 %v1399_v4, %s2335_s14 }
 0x9fe   : > { %v1401_v5 = vpop.permute.xlu0 %1400 }
 0x9ff   : > { %v1402_v6 = vsel %vm2520_vm5, %v1401_v5, %v1399_v4 }
 0xa00   : > { %1403 = vrot.lane.b32.xlu1 %v1402_v6, %s2336_s15 }
 0xa72   : > { %v1404_v7 = vpop.permute.xlu1 %1403 }
 0xa73   : > { %v1405_v8 = vsel %vm2529_vm6, %v1404_v7, %v1402_v6 }
 0xa74   : > { %1406 = vrot.lane.b32.xlu0 %v1405_v8, %s2337_s16 }
 0xae6   : > { %v1407_v9 = vpop.permute.xlu0 %1406 }
 0xae7   : > { %v1408_v10 = vsel %vm2539_vm7, %v1407_v9, %v1405_v8 }
 0xae8   : > { %v1484_v12 = vadd.f32 %v1483_v57, %v1408_v10 }
 0xaea   : > { %v1487_v13 = vmul.f32 0.35355338, %v1484_v12 }
 0xaec   : > { %v1488_v15 = vadd.f32 %v1487_v13, %v2548_v56 }
 0xaee   : > { %v1489_v16 = vsel %vm631_vm2, %v1488_v15, -inf }
 0xaef   : > { %1490 = vmax.xlane.f32.xlu1 %v1489_v16 }
 0xb00   : > { %1652 = vrot.lane.b32.xlu1 %v2486_v23, %s2343_s18  ;;  %v626_v23 = vld [vmem:[%s2712_s9 + $0x10] sm:$0xff] }
 0xb01   : > { %2241 = vmatpush3.msra.mxu1 %v626_v23 }
 0xb02   : > { %2250 = vmatprep.subr.mxu1 %v2331_v11 }
 0xb04   : > { %1650 = vrot.lane.b32.xlu1 %v2490_v25, %s2343_s18 }
 0xb08   : > { %1745 = vrot.lane.b32.xlu1 %v2504_v28, %s2343_s18 }
 0xb7c   : > { %v1491_v17 = vpop.xlane.xlu1 %1490 }
 0xb7d   : > { %v1492_v18 = vsub.f32 %v1488_v15, %v1491_v17 }
 0xb7f   : > { %v1493_v19 = vmul.f32 1.442695, %v1492_v18 }
 0xb80   : > { %v1653_v26 = vpop.permute.xlu1 %1652 }
 0xb81   : > { %2311 = vpow2.f32 %v1493_v19 }
 0xb84   : > { %v1651_v29 = vpop.permute.xlu1 %1650 }
 0xb88   : > { %v1746_v33 = vpop.permute.xlu1 %1745 }
 0xb8b   : > { %v2312_v21 = vpop.eup %2311 }
 0xb8c   : > { %v1495_v22 = vsel %vm631_vm2, %v2312_v21, 0.0 }
 0xb8d   : > { %1496 = vadd.xlane.f32.xlu0 %v1495_v22  ;;  %v2118_v22 = vld [vmem:[%s2715_s12] ss:$0 sm:$0xff] }
 0xba3   : > { %1500 = vrot.lane.b32.xlu0 %v2484_v20, %s2344_s19 }
 0xba7   : > { %1747 = vrot.lane.b32.xlu0 %v2484_v20, %s2345_s20  ;;  %s435_s20 = scalar_lea.vmem %s2716_s13, %s2084_s28 }
 0xc1a   : > { %v1497_v25 = vpop.xlane.xlu0 %1496 }
 0xc1b   : > { %2313 = vrcp.f32 %v1497_v25 }
 0xc1e   : > { %v1501_v28 = vpop.permute.xlu0 %1500 }
 0xc1f   : > { %2236 = vmatpush3.msra.mxu0 %v1501_v28 }
 0xc20   : > { %2245 = vmatprep.subr.mxu0 %v2331_v11 }
 0xc22   : > { %v1748_v31 = vpop.permute.xlu0 %1747 }
 0xc25   : > { %v2314_v24 = vpop.eup %2313 }
 0xc26   : > { %v1499_v27 = vmul.f32 %v2314_v24, %v2312_v21 }
 0xc28   : > { %2238 = vmatmul.mubr.msk.f32.vlgmr.msra.gmra.mrb[12].mxu0 %vm631_vm2, %v1499_v27 }
 0xc29   : > { %2246 = vmatpush3.xpose.msk.msra.mxu0 %vm631_vm2, %v1653_v26  ;;  %2247 = vmatprep.mubr.msk.f32.mxu0 %vm2330_vm0, %v2331_v11 }
 0xc2a   : > { %2255 = vmatprep.subr.mxu0 %v2331_v11 }
 0xc2c   : > { %2248 = vmatmul.mubr.msk.f32.vlgmr.msra.gmra.mrb[14].mxu0 %vm631_vm2, %v1651_v29 }
 0xc2d   : > { %2257 = vmatprep.mubr.msk.f32.mxu0 %vm2330_vm0, %v2331_v11 }
 0xcfb   : > { %v1572_v30 = vpop.f32.mrb[12].mxu0 }
 0xcfc   : > { %v2239_v32 = vpop.f32.mrb[13].mxu0  ;;  %2243 = vmatmul.mubr.msk.f32.vlgmr.msra.gmra.mrb[12].mxu1 %vm631_vm2, %v1572_v30 }
 0xcfd   : > { %2251 = vmatpush3.xpose.msk.msra.mxu1 %vm631_vm2, %v1748_v31  ;;  %2252 = vmatprep.mubr.msk.f32.mxu1 %vm2330_vm0, %v2331_v11 }
 0xcfe   : > { %2260 = vmatprep.subr.mxu1 %v2331_v11 }
 0xcff   : > { %v1724_v34 = vpop.f32.mrb[14].mxu0 }
 0xd00   : > { %v1728_v35 = vrot.slane %v1724_v34, 1  ;;  %v2249_v36 = vpop.f32.mrb[15].mxu0  ;;  %2253 = vmatmul.mubr.msk.f32.vlgmr.msra.gmra.mrb[14].mxu1 %vm631_vm2, %v1746_v33  ;;  %v1733_v37 = vsel %vm631_vm2, %v1724_v34, 0.0 }
 0xd01   : > { %2262 = vmatprep.mubr.msk.f32.mxu1 %vm2330_vm0, %v2331_v11 }
 0xd02   : > { %1730 = vrot.lane.b32.xlu0 %v1728_v35, %s2333_s29  ;;  %s2346_s29 = smov 40  }
 0xd74   : > { %v1731_v38 = vpop.permute.xlu0 %1730 }
 0xd75   : > { %v1734_v39 = vsel %vm714_vm3, %v1733_v37, %v1731_v38 }
 0xd76   : > { %v1735_v40 = vsel %vm716_vm4, %v1734_v39, 0.0 }
 0xd77   : > { %1736 = vrot.lane.b32.xlu1 %v1735_v40, %s2335_s14 }
 0xdcf   : > { %v1645_v41 = vpop.f32.mrb[12].mxu1 }
 0xdd0   : > { %v1649_v42 = vadd.f32 %v1645_v41, %v2615_v60  ;;  %v2244_v44 = vpop.f32.mrb[13].mxu1 }
 0xdd3   : > { %v1819_v45 = vpop.f32.mrb[14].mxu1 }
 0xdd4   : > { %v2254_v46 = vpop.f32.mrb[15].mxu1 }
 0xde9   : > { %v1737_v48 = vpop.permute.xlu1 %1736 }
 0xdea   : > { %v1738_v11 = vsel %vm2520_vm5, %v1737_v48, %v1735_v40 }
 0xdeb   : > { %1739 = vrot.lane.b32.xlu0 %v1738_v11, %s2336_s15 }
 0xe5d   : > { %v1740_v49 = vpop.permute.xlu0 %1739 }
 0xe5e   : > { %v1741_v50 = vsel %vm2529_vm6, %v1740_v49, %v1738_v11 }
 0xe5f   : > { %1742 = vrot.lane.b32.xlu1 %v1741_v50, %s2337_s16 }
 0xed1   : > { %v1743_v51 = vpop.permute.xlu1 %1742 }
 0xed2   : > { %v1744_v53 = vsel %vm2539_vm7, %v1743_v51, %v1741_v50 }
 0xed3   : > { %v1820_v54 = vadd.f32 %v1819_v45, %v1744_v53 }
 0xed5   : > { %v1823_v55 = vmul.f32 0.35355338, %v1820_v54 }
 0xed7   : > { %v1824_v57 = vadd.f32 %v1823_v55, %v2548_v56  ;;  %v627_v56 = vld [vmem:[%s2712_s9 + $0x18] sm:$0xff] }
 0xed8   : > { %2261 = vmatpush3.msra.mxu1 %v627_v56 }
 0xed9   : > { %v1825_v58 = vsel %vm631_vm2, %v1824_v57, -inf }
 0xeda   : > { %1826 = vmax.xlane.f32.xlu0 %v1825_v58 }
 0xef0   : > { %1836 = vrot.lane.b32.xlu0 %v2484_v20, %s2346_s29 }
 0xf67   : > { %v1827_v43 = vpop.xlane.xlu0 %1826 }
 0xf68   : > { %v1828_v59 = vsub.f32 %v1824_v57, %v1827_v43 }
 0xf6a   : > { %v1829_v47 = vmul.f32 1.442695, %v1828_v59 }
 0xf6b   : > { %v1837_v60 = vpop.permute.xlu0 %1836 }
 0xf6c   : > { %2315 = vpow2.f32 %v1829_v47  ;;  %2256 = vmatpush3.msra.mxu0 %v1837_v60 }
 0xf76   : > { %v2316_v61 = vpop.eup %2315 }
 0xf77   : > { %v1831_v52 = vsel %vm631_vm2, %v2316_v61, 0.0 }
 0xf78   : > { %1832 = vadd.xlane.f32.xlu1 %v1831_v52 }
0x1005   : > { %v1833_v62 = vpop.xlane.xlu1 %1832 }
0x1006   : > { %2317 = vrcp.f32 %v1833_v62 }
0x1010   : > { %v2318_v63 = vpop.eup %2317 }
0x1011   : > { %v1835_v0 = vmul.f32 %v2318_v63, %v2316_v61 }
0x1013   : > { %2258 = vmatmul.mubr.msk.f32.vlgmr.msra.gmra.mrb[16].mxu0 %vm631_vm2, %v1835_v0 }
0x10e6   : > { %v1908_v20 = vpop.f32.mrb[16].mxu0 }
0x10e7   : > { %v2259_v1 = vpop.f32.mrb[17].mxu0  ;;  %2263 = vmatmul.mubr.msk.f32.vlgmr.msra.gmra.mrb[16].mxu1 %vm631_vm2, %v1908_v20 }
0x11ba   : > { %v1981_v2 = vpop.f32.mrb[16].mxu1 }
0x11bb   : > { %v1985_v4 = vadd.f32 %v1981_v2, %v1649_v42  ;;  %v2264_v5 = vpop.f32.mrb[17].mxu1 }
0x11bd   : > { %v1993_v6 = vadd.f32 %v2116_v3, %v1985_v4 }
0x11bf   : > { %v1994_v7 = vadd.f32 %v1993_v6, %v2461_v14  ;;  %v2117_v14 = vld [vmem:[%s2714_s11] ss:$0 sm:$0xff] }
0x11c1   : > { %v1995_v8 = vsel %vm448_vm1, %v1994_v7, 0.0 }
0x11c2   : > { %1996 = vadd.xlane.f32.xlu1 %v1995_v8 }
0x124f   : > { %v1997_v9 = vpop.xlane.xlu1 %1996 }
0x1250   : > { %v1999_v10 = vmul.f32 0.03125, %v1997_v9 }
0x1252   : > { %v2000_v12 = vsub.f32 %v1994_v7, %v1999_v10 }
0x1254   : > { %v2001_v13 = vmul.f32 %v2000_v12, %v2000_v12 }
0x1256   : > { %v2002_v15 = vsel %vm448_vm1, %v2001_v13, 0.0 }
0x1257   : > { %2003 = vadd.xlane.f32.xlu1 %v2002_v15 }
0x12e4   : > { %v2004_v16 = vpop.xlane.xlu1 %2003 }
0x12e5   : > { %v2005_v17 = vmul.f32 0.03125, %v2004_v16 }
0x12e7   : > { %v2006_v18 = vadd.f32 1e-05, %v2005_v17 }
0x12e9   : > { %2319 = vrsqrt.f32 %v2006_v18 }
0x12f3   : > { %v2320_v19 = vpop.eup %2319 }
0x12f4   : > { %v2008_v21 = vmul.f32 %v2320_v19, %v2000_v12 }
0x12f6   : > { %v2016_v23 = vmul.f32 %v2117_v14, %v2008_v21 }
0x12f8   : > { %v2024_v25 = vadd.f32 %v2118_v22, %v2016_v23 }
0x12fa   : > { %2025 = vst.msk [vmem:[%s435_s20] sm:$0xff] %vm448_vm1, %v2024_v25 }
0x12fb PF: > { %s23_s25 = sadd.s32 1, %s2327_s25  }
0x12fc   : > { %p20_p4 = scmp.ge.s32.totalorder %s23_s25, 4  }
0x12fe   :  { %22 = sbr.rel (!%p20_p4) target bundleno = 1 (0x1), region = 102 }

</bundles_post_ra>
